<compile_context>
chip_gen: v7x
topology: tpu7x:2x2x1
jax: 0.10.0
libtpu: 0.0.40
codegen_flags: <defaults>
</compile_context>

<pallas_src>
import functools

import jax
import jax.numpy as jnp
from jax import lax
from jax.experimental import pallas as pl
from jax.experimental.pallas import tpu as pltpu


def _round_up(x, m):
    return ((x + m - 1) // m) * m


def _choose_tile(hw, c, pred_itemsize, lab_itemsize, block_budget_bytes):
    """Pick a lane tile: multiple of 128, as large as the VMEM budget allows,
    preferably an exact divisor of the (128-rounded) pixel count so no pad
    copy is needed."""
    per_px_bytes = c * pred_itemsize + lab_itemsize
    tile_max = max(128, (block_budget_bytes // per_px_bytes) // 128 * 128)
    base = _round_up(hw, 128)
    n128 = base // 128
    best = 128
    for k in range(1, n128 + 1):                 # trace-time Python loop
        t = 128 * k
        if t > tile_max:
            break
        if n128 % k == 0:
            best = t
    tile_p = best
    # If the divisor-based tile is far below budget (e.g. prime tile counts),
    # fall back to a budget-sized tile + pad + in-kernel mask.
    if tile_p * 8 < min(tile_max, base):
        tile_p = min(tile_max, base)
    n_pad = _round_up(hw, tile_p)
    return tile_p, n_pad


def _loss_stats_kernel(pred_ref, lab_ref,
                       tp_ref, cp_ref, cc_ref, ce_ref,
                       tp_acc, cp_acc, cc_acc, ce_acc,
                       *, hw, n_pad, tile_p, tiles_per_split):
    c_idx = pl.program_id(0)   # core-parallel slice of the pixel-tile range
    b = pl.program_id(1)
    p = pl.program_id(2)

    # per-core-slice accumulator init (c_idx is fixed within a slice)
    @pl.when((b == 0) & (p == 0))
    def _():
        tp_acc[...] = jnp.zeros_like(tp_acc)
        cp_acc[...] = jnp.zeros_like(cp_acc)
        cc_acc[...] = jnp.zeros_like(cc_acc)
        ce_acc[...] = jnp.zeros_like(ce_acc)

    logits = pred_ref[0].astype(jnp.float32)          # [C, tile_p]
    labels = lab_ref[0].astype(jnp.int32)             # [1, tile_p]
    C = logits.shape[0]

    # softmax over the class (sublane) axis; pixels stay dense on lanes
    m = jnp.max(logits, axis=0, keepdims=True)        # [1, tile_p]
    e = jnp.exp(logits - m)                           # [C, tile_p]
    s = jnp.sum(e, axis=0, keepdims=True)             # [1, tile_p]
    inv_s = pl.reciprocal(s, approx=False)            # 1 reciprocal/pixel
    probs = e * inv_s                                 # [C, tile_p]
    logsumexp = m + jnp.log(s)                        # [1, tile_p]

    # one-hot encoding of the target class
    cls = lax.broadcasted_iota(jnp.int32, (C, tile_p), 0)
    onehot = (cls == labels).astype(jnp.float32)      # [C, tile_p]

    # cross-entropy contribution: logsumexp - logit at target class
    logit_t = jnp.sum(logits * onehot, axis=0, keepdims=True)   # [1, tile_p]
    ce_w = logsumexp - logit_t                                  # [1, tile_p]

    if n_pad > hw:  # static specialization: masking only when the pixel axis was padded
        tile_global = c_idx * tiles_per_split + p
        pix = tile_global * tile_p + lax.broadcasted_iota(jnp.int32, (1, tile_p), 1)
        validf = (pix < hw).astype(jnp.float32)       # [1, tile_p]
        pv = probs * validf
        ov = onehot * validf
        ce_w = ce_w * validf
    else:
        pv = probs
        ov = onehot

    # accumulate partial sums in VMEM scratch. With big tiles this lowers to
    # vreg VALU adds across the lane chunks plus a single XLU reduce per stat
    # per step, so the XLU never binds.
    ce_acc[...] += jnp.sum(ce_w, axis=-1, keepdims=True)          # [1, 1]
    tp_acc[...] += jnp.sum(probs * ov, axis=-1, keepdims=True)    # [C, 1]
    cp_acc[...] += jnp.sum(pv, axis=-1, keepdims=True)            # [C, 1]
    cc_acc[...] += jnp.sum(ov, axis=-1, keepdims=True)            # [C, 1]

    # single deferred writeback of this core-slice's stats
    @pl.when((b == pl.num_programs(1) - 1) & (p == pl.num_programs(2) - 1))
    def _():
        tp_ref[0] = tp_acc[...]
        cp_ref[0] = cp_acc[...]
        cc_ref[0] = cc_acc[...]
        ce_ref[0] = ce_acc[...]


def dc_and_ce_loss(prediction, gt_mask, *, smooth=1.0,
                   block_budget_bytes=8 * 1024 * 1024):
    """prediction: [B, C, H, W] logits (any float dtype);
    gt_mask: [B, 1, H, W] class ids (any int/float dtype)."""
    B, C, H, W = prediction.shape
    HW = H * W

    pred_itemsize = jnp.dtype(prediction.dtype).itemsize
    lab_itemsize = jnp.dtype(gt_mask.dtype).itemsize

    tile_p, n_pad = _choose_tile(HW, C, pred_itemsize, lab_itemsize,
                                 block_budget_bytes)
    n_tiles = n_pad // tile_p
    n_split = 2 if (n_tiles % 2 == 0 and n_tiles >= 2) else 1
    tiles_per_split = n_tiles // n_split

    # NCHW consumed directly as [B, C, H*W] -- no transpose pass, native dtypes
    pred3 = prediction.reshape(B, C, HW)
    if gt_mask.ndim == 4:
        lab3 = gt_mask[:, :1].reshape(B, 1, HW)
    else:
        lab3 = gt_mask.reshape(B, 1, HW)
    if n_pad != HW:
        # Only triggers for ragged pixel counts (HW not divisor-friendly);
        # zero-padded logits are finite, the in-kernel mask drops their stats.
        pred3 = jnp.pad(pred3, ((0, 0), (0, 0), (0, n_pad - HW)))
        lab3 = jnp.pad(lab3, ((0, 0), (0, 0), (0, n_pad - HW)))

    kernel = functools.partial(_loss_stats_kernel, hw=HW, n_pad=n_pad,
                               tile_p=tile_p, tiles_per_split=tiles_per_split)

    block_bytes = tile_p * (C * pred_itemsize + lab_itemsize)
    vmem_limit = int(min(48 * 2**20, max(32 * 2**20, 3 * block_bytes + (4 << 20))))

    cost = pl.CostEstimate(
        flops=int(10 * C * B * n_pad),
        transcendentals=int((C + 2) * B * n_pad),
        bytes_accessed=int(B * n_pad * (C * pred_itemsize + lab_itemsize)
                           + 4 * (3 * C + 1) * n_split),
    )

    tp_o, cp_o, cc_o, ce_o = pl.pallas_call(
        kernel,
        out_shape=(
            jax.ShapeDtypeStruct((n_split, C, 1), jnp.float32),
            jax.ShapeDtypeStruct((n_split, C, 1), jnp.float32),
            jax.ShapeDtypeStruct((n_split, C, 1), jnp.float32),
            jax.ShapeDtypeStruct((n_split, 1, 1), jnp.float32),
        ),
        grid_spec=pltpu.PrefetchScalarGridSpec(
            num_scalar_prefetch=0,
            grid=(n_split, B, tiles_per_split),
            in_specs=[
                pl.BlockSpec((1, C, tile_p),
                             lambda c, b, p: (b, 0, c * tiles_per_split + p)),
                pl.BlockSpec((1, 1, tile_p),
                             lambda c, b, p: (b, 0, c * tiles_per_split + p)),
            ],
            out_specs=[
                pl.BlockSpec((1, C, 1), lambda c, b, p: (c, 0, 0)),
                pl.BlockSpec((1, C, 1), lambda c, b, p: (c, 0, 0)),
                pl.BlockSpec((1, C, 1), lambda c, b, p: (c, 0, 0)),
                pl.BlockSpec((1, 1, 1), lambda c, b, p: (c, 0, 0)),
            ],
            scratch_shapes=[
                pltpu.VMEM((C, 1), jnp.float32),
                pltpu.VMEM((C, 1), jnp.float32),
                pltpu.VMEM((C, 1), jnp.float32),
                pltpu.VMEM((1, 1), jnp.float32),
            ],
        ),
        compiler_params=pltpu.CompilerParams(
            dimension_semantics=("parallel", "arbitrary", "arbitrary"),
            vmem_limit_bytes=vmem_limit),
        cost_estimate=cost,
    )(pred3, lab3)

    # sum the per-core-slice partial stats (tiny O(C) glue)
    tp = jnp.sum(tp_o[:, :, 0], axis=0)
    col_prob = jnp.sum(cp_o[:, :, 0], axis=0)
    col_cnt = jnp.sum(cc_o[:, :, 0], axis=0)
    ce_sum = jnp.sum(ce_o)

    fp = col_prob - tp
    fn = col_cnt - tp

    # CrossEntropyLoss (mean over all pixels)
    ce_loss = ce_sum / (B * HW)
    # SoftDiceLoss: batch_dice=True (reduce over batch+spatial), do_bg=True
    dice = (2.0 * tp + smooth) / (2.0 * tp + fp + fn + smooth)
    dc_loss = -jnp.mean(dice)
    return ce_loss + dc_loss


def loss_forward(prediction, gt):
    """Mirror of `Loss.forward(prediction, gt)` where gt is a tuple/list; gt[0] is the mask."""
    pred_A = prediction
    gt_mask = gt[0]
    return dc_and_ce_loss(pred_A, gt_mask)


def _reference_loss(prediction, gt_mask, smooth=1.0):
    """Pure-JAX reference of DC_and_CE_loss for validation."""
    B, C, H, W = prediction.shape
    labels = gt_mask[:, 0].astype(jnp.int32)                     # [B, H, W]
    logp = jax.nn.log_softmax(prediction.astype(jnp.float32), axis=1)
    ce = -jnp.mean(jnp.take_along_axis(logp, labels[:, None], axis=1))
    p = jax.nn.softmax(prediction.astype(jnp.float32), axis=1)
    onehot = jax.nn.one_hot(labels, C, axis=1)                   # [B, C, H, W]
    axes = (0, 2, 3)
    tp = jnp.sum(p * onehot, axis=axes)
    fp = jnp.sum(p * (1.0 - onehot), axis=axes)
    fn = jnp.sum((1.0 - p) * onehot, axis=axes)
    dice = (2.0 * tp + smooth) / (2.0 * tp + fp + fn + smooth)
    return ce - jnp.mean(dice)


if __name__ == "__main__":
    key = jax.random.PRNGKey(0)
    B, C, H, W = 2, 4, 16, 16
    k1, k2, k3, k4 = jax.random.split(key, 4)

    prediction = jax.random.normal(k1, (B, C, H, W), dtype=jnp.float32)
    # gt is a list/tuple of targets (deep-supervision style); gt[0] is the full-res mask
    gt_mask = jax.random.randint(k2, (B, 1, H, W), 0, C).astype(jnp.float32)
    gt = (gt_mask,)

    loss = loss_forward(prediction, gt)
    loss = jax.block_until_ready(loss)
    ref = _reference_loss(prediction, gt_mask)
    assert jnp.isfinite(loss), "loss is not finite"
    assert jnp.allclose(loss, ref, rtol=1e-5, atol=1e-5), (loss, ref)

    # Exercise the multi-tile + 2-way core-parallel split path with a tiny budget.
    loss2 = dc_and_ce_loss(prediction, gt_mask,
                           block_budget_bytes=(C + 1) * 128 * 4)
    loss2 = jax.block_until_ready(loss2)
    assert jnp.allclose(loss2, ref, rtol=1e-5, atol=1e-5), (loss2, ref)

    # Exercise the ragged-tail (pad + in-kernel mask) path: HW not a multiple of 128.
    B2, C2, H2, W2 = 1, 3, 10, 10
    pred2 = jax.random.normal(k3, (B2, C2, H2, W2), dtype=jnp.float32)
    mask2 = jax.random.randint(k4, (B2, 1, H2, W2), 0, C2).astype(jnp.float32)
    loss3 = jax.block_until_ready(dc_and_ce_loss(pred2, mask2))
    ref3 = _reference_loss(pred2, mask2)
    assert jnp.allclose(loss3, ref3, rtol=1e-5, atol=1e-5), (loss3, ref3)

    print("KERNEL_OK")
</pallas_src>

<mosaic_0001>
module attributes {stable_mosaic.version = 11 : i64} {
  func.func @_loss_stats_kernel(%arg0: i32, %arg1: i32, %arg2: i32, %arg3: memref<1x4x256xf32, #tpu.memory_space<vmem>>, %arg4: memref<1x1x256xf32, #tpu.memory_space<vmem>>, %arg5: memref<1x4x1xf32, #tpu.memory_space<vmem>>, %arg6: memref<1x4x1xf32, #tpu.memory_space<vmem>>, %arg7: memref<1x4x1xf32, #tpu.memory_space<vmem>>, %arg8: memref<1x1x1xf32, #tpu.memory_space<vmem>>, %arg9: memref<4x1xf32, #tpu.memory_space<vmem>>, %arg10: memref<4x1xf32, #tpu.memory_space<vmem>>, %arg11: memref<4x1xf32, #tpu.memory_space<vmem>>, %arg12: memref<1x1xf32, #tpu.memory_space<vmem>>) attributes {dimension_semantics = [#tpu.dimension_semantics<parallel>, #tpu.dimension_semantics<arbitrary>, #tpu.dimension_semantics<arbitrary>], iteration_bounds = array<i64: 1, 2, 1>, scalar_prefetch = 0 : i64, scratch_operands = 4 : i64, tpu.core_type = #tpu.core_type<tc>, window_params = [{transform_indices = @transform_0, window_bounds = array<i64: 1, 4, 256>}, {transform_indices = @transform_1, window_bounds = array<i64: 1, 1, 256>}, {transform_indices = @transform_2, window_bounds = array<i64: 1, 4, 1>}, {transform_indices = @transform_3, window_bounds = array<i64: 1, 4, 1>}, {transform_indices = @transform_4, window_bounds = array<i64: 1, 4, 1>}, {transform_indices = @transform_5, window_bounds = array<i64: 1, 1, 1>}]} {
    %c0_i32 = arith.constant 0 : i32
    %0 = arith.cmpi eq, %arg1, %c0_i32 : i32
    %c0_i32_0 = arith.constant 0 : i32
    %1 = arith.cmpi eq, %arg2, %c0_i32_0 : i32
    %2 = arith.andi %0, %1 : i1
    %3 = arith.extui %2 : i1 to i32
    %c0_i32_1 = arith.constant 0 : i32
    %4 = arith.cmpi ne, %3, %c0_i32_1 : i32
    scf.if %4 {
      %cst_31 = arith.constant 0.000000e+00 : f32
      %57 = vector.broadcast %cst_31 : f32 to vector<4x1xf32>
      %c0_32 = arith.constant 0 : index
      %c0_33 = arith.constant 0 : index
      %58 = vector.load %arg9[%c0_32, %c0_33] : memref<4x1xf32, #tpu.memory_space<vmem>>, vector<4x1xf32>
      tpu.vector_store %arg9[%c0_32, %c0_33], %57 {strides = array<i32>} : memref<4x1xf32, #tpu.memory_space<vmem>>, vector<4x1xf32>,
      %cst_34 = arith.constant 0.000000e+00 : f32
      %59 = vector.broadcast %cst_34 : f32 to vector<4x1xf32>
      %c0_35 = arith.constant 0 : index
      %c0_36 = arith.constant 0 : index
      %60 = vector.load %arg10[%c0_35, %c0_36] : memref<4x1xf32, #tpu.memory_space<vmem>>, vector<4x1xf32>
      tpu.vector_store %arg10[%c0_35, %c0_36], %59 {strides = array<i32>} : memref<4x1xf32, #tpu.memory_space<vmem>>, vector<4x1xf32>,
      %cst_37 = arith.constant 0.000000e+00 : f32
      %61 = vector.broadcast %cst_37 : f32 to vector<4x1xf32>
      %c0_38 = arith.constant 0 : index
      %c0_39 = arith.constant 0 : index
      %62 = vector.load %arg11[%c0_38, %c0_39] : memref<4x1xf32, #tpu.memory_space<vmem>>, vector<4x1xf32>
      tpu.vector_store %arg11[%c0_38, %c0_39], %61 {strides = array<i32>} : memref<4x1xf32, #tpu.memory_space<vmem>>, vector<4x1xf32>,
      %cst_40 = arith.constant 0.000000e+00 : f32
      %63 = vector.broadcast %cst_40 : f32 to vector<1x1xf32>
      %c0_41 = arith.constant 0 : index
      %c0_42 = arith.constant 0 : index
      %64 = vector.load %arg12[%c0_41, %c0_42] : memref<1x1xf32, #tpu.memory_space<vmem>>, vector<1x1xf32>
      tpu.vector_store %arg12[%c0_41, %c0_42], %63 {strides = array<i32>} : memref<1x1xf32, #tpu.memory_space<vmem>>, vector<1x1xf32>,
    } else {
    }
    %c0 = arith.constant 0 : index
    %c0_2 = arith.constant 0 : index
    %c0_3 = arith.constant 0 : index
    %5 = vector.load %arg3[%c0, %c0_2, %c0_3] : memref<1x4x256xf32, #tpu.memory_space<vmem>>, vector<1x4x256xf32>
    %6 = vector.shape_cast %5 : vector<1x4x256xf32> to vector<4x256xf32>
    %c0_4 = arith.constant 0 : index
    %c0_5 = arith.constant 0 : index
    %c0_6 = arith.constant 0 : index
    %7 = vector.load %arg4[%c0_4, %c0_5, %c0_6] : memref<1x1x256xf32, #tpu.memory_space<vmem>>, vector<1x1x256xf32>
    %8 = vector.shape_cast %7 : vector<1x1x256xf32> to vector<1x256xf32>
    %9 = arith.fptosi %8 : vector<1x256xf32> to vector<1x256xi32>
    %cst = arith.constant dense<0xFF800000> : vector<256xf32>
    %10 = vector.multi_reduction <maximumf>, %6, %cst [0] : vector<4x256xf32> to vector<256xf32>
    %11 = vector.shape_cast %10 : vector<256xf32> to vector<1x256xf32>
    %12 = vector.broadcast %11 : vector<1x256xf32> to vector<4x256xf32>
    %13 = arith.subf %6, %12 : vector<4x256xf32>
    %14 = math.exp %13 : vector<4x256xf32>
    %cst_7 = arith.constant dense<0.000000e+00> : vector<256xf32>
    %15 = vector.multi_reduction <add>, %14, %cst_7 [0] : vector<4x256xf32> to vector<256xf32>
    %16 = vector.shape_cast %15 : vector<256xf32> to vector<1x256xf32>
    %17 = tpu.reciprocal %16 : vector<1x256xf32> -> vector<1x256xf32>
    %18 = vector.broadcast %17 : vector<1x256xf32> to vector<4x256xf32>
    %19 = arith.mulf %14, %18 : vector<4x256xf32>
    %20 = math.log %16 : vector<1x256xf32>
    %21 = arith.addf %11, %20 : vector<1x256xf32>
    %22 = tpu.iota {dimensions = array<i32: 0>} : vector<4x256xi32>
    %23 = vector.broadcast %9 : vector<1x256xi32> to vector<4x256xi32>
    %24 = arith.cmpi eq, %22, %23 : vector<4x256xi32>
    %25 = arith.extui %24 : vector<4x256xi1> to vector<4x256xi32>
    %26 = arith.sitofp %25 : vector<4x256xi32> to vector<4x256xf32>
    %27 = arith.mulf %6, %26 : vector<4x256xf32>
    %cst_8 = arith.constant dense<0.000000e+00> : vector<256xf32>
    %28 = vector.multi_reduction <add>, %27, %cst_8 [0] : vector<4x256xf32> to vector<256xf32>
    %29 = vector.shape_cast %28 : vector<256xf32> to vector<1x256xf32>
    %30 = arith.subf %21, %29 : vector<1x256xf32>
    %c0_9 = arith.constant 0 : index
    %c0_10 = arith.constant 0 : index
    %31 = vector.load %arg12[%c0_9, %c0_10] : memref<1x1xf32, #tpu.memory_space<vmem>>, vector<1x1xf32>
    %cst_11 = arith.constant dense<0.000000e+00> : vector<1xf32>
    %32 = vector.multi_reduction <add>, %30, %cst_11 [1] : vector<1x256xf32> to vector<1xf32>
    %33 = vector.shape_cast %32 : vector<1xf32> to vector<1x1xf32>
    %34 = arith.addf %31, %33 : vector<1x1xf32>
    %c0_12 = arith.constant 0 : index
    %c0_13 = arith.constant 0 : index
    %35 = vector.load %arg12[%c0_12, %c0_13] : memref<1x1xf32, #tpu.memory_space<vmem>>, vector<1x1xf32>
    tpu.vector_store %arg12[%c0_12, %c0_13], %34 {strides = array<i32>} : memref<1x1xf32, #tpu.memory_space<vmem>>, vector<1x1xf32>,
    %c0_14 = arith.constant 0 : index
    %c0_15 = arith.constant 0 : index
    %36 = vector.load %arg9[%c0_14, %c0_15] : memref<4x1xf32, #tpu.memory_space<vmem>>, vector<4x1xf32>
    %37 = arith.mulf %19, %26 : vector<4x256xf32>
    %cst_16 = arith.constant dense<0.000000e+00> : vector<4xf32>
    %38 = vector.multi_reduction <add>, %37, %cst_16 [1] : vector<4x256xf32> to vector<4xf32>
    %39 = vector.shape_cast %38 : vector<4xf32> to vector<4x1xf32>
    %40 = arith.addf %36, %39 : vector<4x1xf32>
    %c0_17 = arith.constant 0 : index
    %c0_18 = arith.constant 0 : index
    %41 = vector.load %arg9[%c0_17, %c0_18] : memref<4x1xf32, #tpu.memory_space<vmem>>, vector<4x1xf32>
    tpu.vector_store %arg9[%c0_17, %c0_18], %40 {strides = array<i32>} : memref<4x1xf32, #tpu.memory_space<vmem>>, vector<4x1xf32>,
    %c0_19 = arith.constant 0 : index
    %c0_20 = arith.constant 0 : index
    %42 = vector.load %arg10[%c0_19, %c0_20] : memref<4x1xf32, #tpu.memory_space<vmem>>, vector<4x1xf32>
    %cst_21 = arith.constant dense<0.000000e+00> : vector<4xf32>
    %43 = vector.multi_reduction <add>, %19, %cst_21 [1] : vector<4x256xf32> to vector<4xf32>
    %44 = vector.shape_cast %43 : vector<4xf32> to vector<4x1xf32>
    %45 = arith.addf %42, %44 : vector<4x1xf32>
    %c0_22 = arith.constant 0 : index
    %c0_23 = arith.constant 0 : index
    %46 = vector.load %arg10[%c0_22, %c0_23] : memref<4x1xf32, #tpu.memory_space<vmem>>, vector<4x1xf32>
    tpu.vector_store %arg10[%c0_22, %c0_23], %45 {strides = array<i32>} : memref<4x1xf32, #tpu.memory_space<vmem>>, vector<4x1xf32>,
    %c0_24 = arith.constant 0 : index
    %c0_25 = arith.constant 0 : index
    %47 = vector.load %arg11[%c0_24, %c0_25] : memref<4x1xf32, #tpu.memory_space<vmem>>, vector<4x1xf32>
    %cst_26 = arith.constant dense<0.000000e+00> : vector<4xf32>
    %48 = vector.multi_reduction <add>, %26, %cst_26 [1] : vector<4x256xf32> to vector<4xf32>
    %49 = vector.shape_cast %48 : vector<4xf32> to vector<4x1xf32>
    %50 = arith.addf %47, %49 : vector<4x1xf32>
    %c0_27 = arith.constant 0 : index
    %c0_28 = arith.constant 0 : index
    %51 = vector.load %arg11[%c0_27, %c0_28] : memref<4x1xf32, #tpu.memory_space<vmem>>, vector<4x1xf32>
    tpu.vector_store %arg11[%c0_27, %c0_28], %50 {strides = array<i32>} : memref<4x1xf32, #tpu.memory_space<vmem>>, vector<4x1xf32>,
    %c1_i32 = arith.constant 1 : i32
    %52 = arith.cmpi eq, %arg1, %c1_i32 : i32
    %c0_i32_29 = arith.constant 0 : i32
    %53 = arith.cmpi eq, %arg2, %c0_i32_29 : i32
    %54 = arith.andi %52, %53 : i1
    %55 = arith.extui %54 : i1 to i32
    %c0_i32_30 = arith.constant 0 : i32
    %56 = arith.cmpi ne, %55, %c0_i32_30 : i32
    scf.if %56 {
      %c0_31 = arith.constant 0 : index
      %c0_32 = arith.constant 0 : index
      %57 = vector.load %arg9[%c0_31, %c0_32] : memref<4x1xf32, #tpu.memory_space<vmem>>, vector<4x1xf32>
      %c0_33 = arith.constant 0 : index
      %c0_34 = arith.constant 0 : index
      %c0_35 = arith.constant 0 : index
      %58 = vector.load %arg5[%c0_33, %c0_34, %c0_35] : memref<1x4x1xf32, #tpu.memory_space<vmem>>, vector<1x4x1xf32>
      %59 = vector.shape_cast %58 : vector<1x4x1xf32> to vector<4x1xf32>
      %60 = vector.shape_cast %57 : vector<4x1xf32> to vector<1x4x1xf32>
      tpu.vector_store %arg5[%c0_33, %c0_34, %c0_35], %60 {strides = array<i32>} : memref<1x4x1xf32, #tpu.memory_space<vmem>>, vector<1x4x1xf32>,
      %c0_36 = arith.constant 0 : index
      %c0_37 = arith.constant 0 : index
      %61 = vector.load %arg10[%c0_36, %c0_37] : memref<4x1xf32, #tpu.memory_space<vmem>>, vector<4x1xf32>
      %c0_38 = arith.constant 0 : index
      %c0_39 = arith.constant 0 : index
      %c0_40 = arith.constant 0 : index
      %62 = vector.load %arg6[%c0_38, %c0_39, %c0_40] : memref<1x4x1xf32, #tpu.memory_space<vmem>>, vector<1x4x1xf32>
      %63 = vector.shape_cast %62 : vector<1x4x1xf32> to vector<4x1xf32>
      %64 = vector.shape_cast %61 : vector<4x1xf32> to vector<1x4x1xf32>
      tpu.vector_store %arg6[%c0_38, %c0_39, %c0_40], %64 {strides = array<i32>} : memref<1x4x1xf32, #tpu.memory_space<vmem>>, vector<1x4x1xf32>,
      %c0_41 = arith.constant 0 : index
      %c0_42 = arith.constant 0 : index
      %65 = vector.load %arg11[%c0_41, %c0_42] : memref<4x1xf32, #tpu.memory_space<vmem>>, vector<4x1xf32>
      %c0_43 = arith.constant 0 : index
      %c0_44 = arith.constant 0 : index
      %c0_45 = arith.constant 0 : index
      %66 = vector.load %arg7[%c0_43, %c0_44, %c0_45] : memref<1x4x1xf32, #tpu.memory_space<vmem>>, vector<1x4x1xf32>
      %67 = vector.shape_cast %66 : vector<1x4x1xf32> to vector<4x1xf32>
      %68 = vector.shape_cast %65 : vector<4x1xf32> to vector<1x4x1xf32>
      tpu.vector_store %arg7[%c0_43, %c0_44, %c0_45], %68 {strides = array<i32>} : memref<1x4x1xf32, #tpu.memory_space<vmem>>, vector<1x4x1xf32>,
      %c0_46 = arith.constant 0 : index
      %c0_47 = arith.constant 0 : index
      %69 = vector.load %arg12[%c0_46, %c0_47] : memref<1x1xf32, #tpu.memory_space<vmem>>, vector<1x1xf32>
      %c0_48 = arith.constant 0 : index
      %c0_49 = arith.constant 0 : index
      %c0_50 = arith.constant 0 : index
      %70 = vector.load %arg8[%c0_48, %c0_49, %c0_50] : memref<1x1x1xf32, #tpu.memory_space<vmem>>, vector<1x1x1xf32>
      %71 = vector.shape_cast %70 : vector<1x1x1xf32> to vector<1x1xf32>
      %72 = vector.shape_cast %69 : vector<1x1xf32> to vector<1x1x1xf32>
      tpu.vector_store %arg8[%c0_48, %c0_49, %c0_50], %72 {strides = array<i32>} : memref<1x1x1xf32, #tpu.memory_space<vmem>>, vector<1x1x1xf32>,
    } else {
    }
    return
  }
  func.func @transform_0(%arg0: i32, %arg1: i32, %arg2: i32) -> (i32, i32, i32) {
    %c1_i32 = arith.constant 1 : i32
    %0 = arith.muli %arg0, %c1_i32 : i32
    %1 = arith.addi %0, %arg2 : i32
    %c0_i32 = arith.constant 0 : i32
    %c0_i32_0 = arith.constant 0 : i32
    return %arg1, %c0_i32, %1 : i32, i32, i32
  }
  func.func @transform_1(%arg0: i32, %arg1: i32, %arg2: i32) -> (i32, i32, i32) {
    %c1_i32 = arith.constant 1 : i32
    %0 = arith.muli %arg0, %c1_i32 : i32
    %1 = arith.addi %0, %arg2 : i32
    %c0_i32 = arith.constant 0 : i32
    %c0_i32_0 = arith.constant 0 : i32
    return %arg1, %c0_i32, %1 : i32, i32, i32
  }
  func.func @transform_2(%arg0: i32, %arg1: i32, %arg2: i32) -> (i32, i32, i32) {
    %c0_i32 = arith.constant 0 : i32
    %c0_i32_0 = arith.constant 0 : i32
    %c0_i32_1 = arith.constant 0 : i32
    return %arg0, %c0_i32, %c0_i32_0 : i32, i32, i32
  }
  func.func @transform_3(%arg0: i32, %arg1: i32, %arg2: i32) -> (i32, i32, i32) {
    %c0_i32 = arith.constant 0 : i32
    %c0_i32_0 = arith.constant 0 : i32
    %c0_i32_1 = arith.constant 0 : i32
    return %arg0, %c0_i32, %c0_i32_0 : i32, i32, i32
  }
  func.func @transform_4(%arg0: i32, %arg1: i32, %arg2: i32) -> (i32, i32, i32) {
    %c0_i32 = arith.constant 0 : i32
    %c0_i32_0 = arith.constant 0 : i32
    %c0_i32_1 = arith.constant 0 : i32
    return %arg0, %c0_i32, %c0_i32_0 : i32, i32, i32
  }
  func.func @transform_5(%arg0: i32, %arg1: i32, %arg2: i32) -> (i32, i32, i32) {
    %c0_i32 = arith.constant 0 : i32
    %c0_i32_0 = arith.constant 0 : i32
    %c0_i32_1 = arith.constant 0 : i32
    return %arg0, %c0_i32, %c0_i32_0 : i32, i32, i32
  }
}

</mosaic_0001>

<bundles_post_ra>
// kernel: tpu_custom_call.1
= control target key start
LH: loop header
LB: loop body
LE: loop exit
PB: predicated region body
PF: predicated region fallthrough
CT: control target
= control target key end

     0   :  { %11 = vsyncpa [#allocation7], 0  ;;  %s1204_s0 = inlined_call_operand.hbm [shape: f32[2,4,256], index: 0, kind: input, shape index: {}]   ;;  %s1205_s1 = inlined_call_operand.hbm [shape: f32[2,1,256], index: 1, kind: input, shape index: {}]   ;;  %s1206_s2 = inlined_call_operand.vmem [shape: f32[1,4,1], index: 2, kind: output, shape index: {0}]   ;;  %s1207_s3 = inlined_call_operand.vmem [shape: f32[1,4,1], index: 3, kind: output, shape index: {1}]   ;;  %s1208_s4 = inlined_call_operand.vmem [shape: f32[1,4,1], index: 4, kind: output, shape index: {2}]   ;;  %s1209_s5 = inlined_call_operand.hbm [shape: f32[1,1,1], index: 5, kind: output, shape index: {3}]  }
   0x1   :  { %13 = vsyncpa [#allocation7 + $0x1], 0 }
   0x2   :  { %14 = vsyncpa [#allocation10], 0 }
   0x3   :  { %16 = vsyncpa [#allocation10 + $0x1], 0 }
   0x4   :  { %17 = vsyncpa [#allocation8], 0  ;;  %s980_s18 = smov 0   ;;  %s982_s19 = smov 0  }
   0x5   :  { %s984_s20 = smov 0   ;;  %s986_s21 = smov 0  }
   0x6   :  { %s988_s22 = smov 0   ;;  %s990_s23 = smov 0  }
   0x7 LB: > { %s690_s24 = sadd.s32 4294967295, %s943_s23   ;;  %s38_s25 = sadd.s32 1, %s939_s22  ;;  %s943_s23 = sphi %s990_s23, %s23_s23   ;;  %s939_s22 = sphi %s988_s22, %s1224_s22   ;;  %s935_s21 = sphi %s986_s21, %s1223_s21   ;;  %s931_s20 = sphi %s984_s20, %s1222_s20   ;;  %s927_s19 = sphi %s982_s19, %s1221_s19   ;;  %s923_s18 = sphi %s980_s18, %s1220_s18  }
   0x8   : > { %p40_p0 = scmp.ge.s32.totalorder %s38_s25, 2  ;;  %s53_s26 = sadd.s32 1, %s931_s20 }
   0x9   : > { %p60_p1 = scmp.ne.s32.totalorder %s931_s20, %s927_s19  ;;  %p61_p2 = scmp.eq.s32.totalorder %s943_s23, 0 }
   0xa   : > { %s1226_s25 = smov (%p40_p0, %s38_s25), 0  ;;  %p66_p4 = scmp.ne.s32.totalorder %s927_s19, %s923_s18 }
   0xb   : > { %p1016_p3 = por %p61_p2, %p60_p1  ;;  %s48_s28 = ssub.s32 %s939_s22, %s1226_s25 }
   0xc   : > { %p67_p5 = scmp.eq.s32.totalorder %s690_s24, 0  ;;  %p51_p6 = scmp.eq.s32.totalorder %s48_s28, 0 }
   0xd   : > { %p734_p8 = scmp.lt.s32.totalorder %s943_s23, 2  ;;  %s1034_s6 = sand.u32 1, %s931_s20  }
   0xe   : > { %p1025_p7 = por %p67_p5, %p66_p4  ;;  %s713_s7 = sshll.u32 %s939_s22, 7 }
   0xf   : > { %s1031_s30 = scalar_select %p51_p6, %s931_s20, %s53_s26  }
  0x10   : > { %s1212_s29 = scalar_select %p1025_p7, 1, 0 }
  0x11   : > { %s693_s8 = sshll.u32 %s1034_s6, 3  ;;  %s1041_s11 = scalar_lea.hbm %s1204_s0, %s713_s7 }
  0x12   : > { %s228_s12 = scalar_lea.vmem [#allocation6], %s693_s8  ;;  %p1045_p9 = pnand %p734_p8, %p1016_p3 }
  0x13   : > { %s239_s13 = sshll.u32 %s228_s12, 4  ;;  %s225_s15 = scalar_lea.sflag [#allocation7], %s1034_s6  ;;  %s1049_s13 = int_to_ptr.vmem [resolvable:$true] %s239_s13 }
  0x14   : > { %s799_s16 = scalar_lea.hbm %s1041_s11, 128  ;;  %p801_p13 = pneg %p1045_p9 }
  0x15   : > { %p800_p12 = scmp.ne.s32.totalorder %s1041_s11, %s799_s16  ;;  %s804_s26 = scalar_lea.hbm %s1204_s0, 256 }
  0x16   : > { %p805_p2 = scmp.lt.u32.totalorder %s1041_s11, %s1204_s0  ;;  %p806_p3 = scmp.lt.u32.totalorder %s804_s26, %s799_s16 }
  0x17   : > { %p802_p0 = pnand %p801_p13, %p800_p12  ;;  %p808_p5 = scmp.lt.u32.totalorder %s799_s16, %s1041_s11 }
  0x18   : > { %p807_p4 = por %p806_p3, %p805_p2 }
  0x19   : > { %p803_p1 = pneg %p802_p0 }
  0x1a   : > { %p809_p6 = por %p808_p5, %p807_p4 }
  0x1c   : > { %p810_p8 = pnand %p809_p6, %p803_p1 }
  0x1e   : > { %813 = shalt.err (!%p810_p8)
}
  0x1f   : > { %s814_s7 = scalar_lea.vmem %s1049_s13, 128  ;;  %s945_s8 = smov [#allocation6]  }
  0x20   : > { %p815_p12 = scmp.ne.s32.totalorder %s1049_s13, %s814_s7  ;;  %s819_s9 = sshll.u32 %s945_s8, 4  ;;  %s820_s9 = int_to_ptr.vmem [resolvable:$false] %s819_s9 }
  0x21   : > { %s821_s10 = scalar_lea.vmem %s820_s9, 256  ;;  %p822_p11 = scmp.lt.s32.totalorder %s1049_s13, %s820_s9 }
  0x22   : > { %p817_p0 = pnand %p815_p12, %p801_p13  ;;  %p823_p2 = scmp.lt.s32.totalorder %s821_s10, %s814_s7 }
  0x24   : > { %p818_p10 = pneg %p817_p0  ;;  %p824_p3 = por %p823_p2, %p822_p11 }
  0x26   : > { %p825_p4 = pnand %p824_p3, %p818_p10 }
  0x28   : > { %828 = shalt.err (!%p825_p4)
}
  0x29   : > { %730 = dma.hbm_to_vmem [thread:$0]  (!%p1045_p9), %s1041_s11, 128, %s1049_s13, %s225_s15  }
  0x2a   : > { %p1214_p1 = scmp.lt.s32.totalorder %s943_s23, 3  ;;  %p1215_p5 = scmp.ge.s32.totalorder %s943_s23, 1 }
  0x2b   : > { %s696_s16 = sshll.u32 %s1034_s6, 1  ;;  %s714_s17 = sshll.u32 %s939_s22, 5 }
  0x2c   : > { %p1083_p6 = pnand %p1215_p5, %p1214_p1  ;;  %s1092_s27 = scalar_lea.hbm %s1205_s1, %s714_s17 }
  0x2d   : > { %s250_s28 = scalar_lea.vmem [#allocation9], %s696_s16  ;;  %s247_s11 = scalar_lea.sflag [#allocation10], %s1034_s6 }
  0x2e   : > { %s1216_s12 = scalar_select %p1083_p6, 1, 0 }
  0x2f   : > { %s261_s7 = sshll.u32 %s250_s28, 4  ;;  %s829_s13 = scalar_lea.hbm %s1092_s27, 32  ;;  %s262_s7 = int_to_ptr.vmem [resolvable:$true] %s261_s7 }
  0x30   : > { %p830_p10 = scmp.ne.s32.totalorder %s1092_s27, %s829_s13  ;;  %s834_s9 = scalar_lea.hbm %s1205_s1, 64 }
  0x31   : > { %p835_p12 = scmp.lt.u32.totalorder %s1092_s27, %s1205_s1  ;;  %p836_p0 = scmp.lt.u32.totalorder %s834_s9, %s829_s13 }
  0x32   : > { %p832_p11 = pnand %p830_p10, %p801_p13  ;;  %p838_p3 = scmp.lt.u32.totalorder %s829_s13, %s1092_s27 }
  0x33   : > { %p837_p2 = por %p836_p0, %p835_p12 }
  0x34   : > { %p833_p8 = pneg %p832_p11 }
  0x35   : > { %p839_p4 = por %p838_p3, %p837_p2 }
  0x37   : > { %p840_p1 = pnand %p839_p4, %p833_p8 }
  0x39   : > { %843 = shalt.err (!%p840_p1)
}
  0x3a   : > { %s844_s6 = scalar_lea.vmem %s262_s7, 32  ;;  %s946_s16 = smov [#allocation9]  }
  0x3b   : > { %p845_p5 = scmp.ne.s32.totalorder %s262_s7, %s844_s6  ;;  %s849_s18 = sshll.u32 %s946_s16, 4  ;;  %s850_s18 = int_to_ptr.vmem [resolvable:$false] %s849_s18 }
  0x3c   : > { %s851_s26 = scalar_lea.vmem %s850_s18, 64  ;;  %p852_p7 = scmp.lt.s32.totalorder %s262_s7, %s850_s18 }
  0x3d   : > { %p847_p10 = pnand %p845_p5, %p801_p13  ;;  %p853_p6 = scmp.lt.s32.totalorder %s851_s26, %s844_s6 }
  0x3f   : > { %p848_p11 = pneg %p847_p10  ;;  %p854_p0 = por %p853_p6, %p852_p7 }
  0x41   : > { %p855_p12 = pnand %p854_p0, %p848_p11 }
  0x43   : > { %858 = shalt.err (!%p855_p12)
}
  0x44   : > { %733 = dma.hbm_to_vmem [thread:$0]  (!%p1045_p9), %s1092_s27, 32, %s262_s7, %s247_s11  }
  0x45   : > { %p1217_p8 = scmp.ne.s32.totalorder %s1216_s12, 0 }
  0x46   : > { %s272_s28 = sand.u32 (!%p1217_p8), 1, %s927_s19   ;;  %p1218_p13 = scmp.ne.s32.totalorder (!%p1217_p8), %s1212_s29, 0 }
  0x47   : > { %270 = sbr.rel (%p1217_p8) target bundleno = 342 (0x156), region = 28  ;;  %s700_s13 = sshll.u32 (!%p1217_p8), %s272_s28, 3 }
  0x48   : > { %s273_s15 = scalar_lea.sflag (!%p1217_p8), [#allocation7], %s272_s28  ;;  %s276_s8 = scalar_lea.vmem (!%p1217_p8), [#allocation6], %s700_s13 }
  0x4e   : > { %910 = dma.done.wait (%p1218_p13), %s273_s15, 128  }
  0x4f   : > { %912 = vsyncadd (%p1218_p13), %s273_s15, 4294967168  ;;  %s701_s9 = sshll.u32 %s272_s28, 1  ;;  %s282_s10 = scalar_lea.sflag [#allocation10], %s272_s28 }
  0x50   : > { %s285_s14 = scalar_lea.vmem [#allocation9], %s701_s9 }
  0x51   : > { %914 = dma.done.wait (%p1218_p13), %s282_s10, 32  }
  0x52   : > { %916 = vsyncadd (%p1218_p13), %s282_s10, 4294967264  ;;  %p340_p7 = scmp.eq.s32.totalorder %s935_s21, 0 }
  0x53   : > { %vm346_vm0 = vcmask (%p340_p7), 3072   ;;  %vm350_vm1 = vcmask (%p340_p7), 0   ;;  %v947_v0 = vmov (%p340_p7), 0.0  }
  0x54   : > { %345 = sbr.rel (!%p340_p7) target bundleno = 91 (0x5b), region = 40  ;;  %347 = vst.msk [vmem:[#allocation2] sm:$0xf] (%p340_p7), %vm346_vm0, %v947_v0  ;;  %348 = vst.msk [vmem:[#allocation3] sm:$0xf] (%p340_p7), %vm346_vm0, %v947_v0 }
  0x55   : > { %349 = vst.msk [vmem:[#allocation4] sm:$0xf] (%p340_p7), %vm346_vm0, %v947_v0 }
  0x56   : > { %351 = vst.msk [vmem:[#allocation5] sm:$0x1] (%p340_p7), %vm350_vm1, %v947_v0 }
  0x5b PF: > { %v352_v1 = vld [vmem:[%s276_s8] sm:$0xff]  ;;  %vm358_vm2 = vcmask 1043456   ;;  %v353_v4 = vld [vmem:[%s285_s14] sm:$0x3]  ;;  %v410_v6 = vlaneseq  ;;  %v948_v29 = vmov 0.0   ;;  %p489_p9 = scmp.eq.s32.totalorder %s935_s21, 1 }
  0x5c   : > { %v356_v2 = vcombine.high %v352_v1, %v352_v1  ;;  %v359_v3 = vsel %vm358_vm2, %v352_v1, -inf  ;;  %v717_v10 = vtrunc.f32 %v353_v4  ;;  %vm455_vm5 = vcmask 0  }
  0x5d   : > { %v360_v5 = vrot.slane %v359_v3, 4  ;;  %v411_v13 = vshrl.u32 %v410_v6, 7  ;;  %vm468_vm6 = vcmask 3072  }
  0x5e   : > { %v366_v7 = vsel %vm358_vm2, %v356_v2, -inf  ;;  %v718_v16 = vcvt.f32.s32 %v717_v10 }
  0x5f   : > { %v361_v8 = vmax.f32 %v359_v3, %v360_v5  ;;  %v367_v9 = vrot.slane %v366_v7, 4  ;;  %v414_v19 = vsub.s32 0, %v411_v13  ;;  %v418_v20 = vsub.s32 1, %v411_v13 }
  0x61   : > { %v362_v11 = vrot.slane %v361_v8, 2  ;;  %v368_v12 = vmax.f32 %v366_v7, %v367_v9  ;;  %v415_v24 = vrot.slane %v718_v16, %v414_v19  ;;  %v419_v25 = vrot.slane %v718_v16, %v418_v20 }
  0x63   : > { %v363_v14 = vmax.f32 %v361_v8, %v362_v11  ;;  %v369_v15 = vrot.slane %v368_v12, 2  ;;  %vm420_vm3 = vcmp.eq.s32.totalorder %v411_v13, %v415_v24  ;;  %vm421_vm4 = vcmp.eq.s32.totalorder %v411_v13, %v419_v25 }
  0x64   : > { %v703_v30 = vsel %vm420_vm3, 1.0, %v948_v29  ;;  %v704_v31 = vsel %vm421_vm4, 1.0, %v948_v29 }
  0x65   : > { %v364_v17 = vrot.slane %v363_v14, 1  ;;  %v370_v18 = vmax.f32 %v368_v12, %v369_v15  ;;  %v428_v32 = vcombine.low %v703_v30, %v704_v31  ;;  %v483_v19 = vsel %vm358_vm2, %v704_v31, 0.0  ;;  %v457_v31 = vld [vmem:[#allocation2] sm:$0xf] }
  0x67   : > { %v365_v21 = vmax.f32 %v363_v14, %v364_v17  ;;  %v371_v22 = vrot.slane %v370_v18, 1  ;;  %v430_v33 = vmul.f32 %v428_v32, %v352_v1  ;;  %v482_v17 = vsel %vm358_vm2, %v703_v30, 0.0 }
  0x68   : > { %v484_v24 = vadd.f32 %v483_v19, %v482_v17 }
  0x69   : > { %v372_v23 = vmax.f32 %v370_v18, %v371_v22  ;;  %v432_v35 = vcombine.high %v430_v33, %v430_v33  ;;  %v434_v40 = vsel %vm358_vm2, %v430_v33, 0.0  ;;  %v481_v33 = vld [vmem:[#allocation4] sm:$0xf] }
  0x6a   : > { %v435_v46 = vrot.slane %v434_v40, 4 }
  0x6b   : > { %v375_v26 = vcombine.low %v365_v21, %v372_v23  ;;  %v441_v43 = vsel %vm358_vm2, %v432_v35, 0.0 }
  0x6c   : > { %v442_v47 = vrot.slane %v441_v43, 4  ;;  %v436_v52 = vadd.f32 %v435_v46, %v434_v40 }
  0x6d   : > { %v377_v27 = vsub.f32 %v352_v1, %v375_v26  ;;  %v450_v26 = vld [vmem:[#allocation5] sm:$0x1] }
  0x6e   : > { %v443_v53 = vadd.f32 %v442_v47, %v441_v43  ;;  %v437_v57 = vrot.slane %v436_v52, 2 }
  0x6f   : > { %v378_v28 = vmul.f32 1.442695, %v377_v27 }
  0x70   : > { %v444_v58 = vrot.slane %v443_v53, 2  ;;  %v438_v59 = vadd.f32 %v437_v57, %v436_v52 }
  0x71   : > { %789 = vpow2.f32 %v378_v28  ;;  %v470_v28 = vld [vmem:[#allocation3] sm:$0xf] }
  0x72   : > { %v445_v60 = vadd.f32 %v444_v58, %v443_v53  ;;  %v439_v61 = vrot.slane %v438_v59, 1 }
  0x74   : > { %v446_v62 = vrot.slane %v445_v60, 1  ;;  %v440_v3 = vadd.f32 %v439_v61, %v438_v59 }
  0x76   : > { %v447_v6 = vadd.f32 %v446_v62, %v445_v60 }
  0x7b   : > { %v790_v34 = vpop.eup %789 }
  0x7c   : > { %v381_v36 = vcombine.high %v790_v34, %v790_v34  ;;  %v383_v37 = vsel %vm358_vm2, %v790_v34, 0.0 }
  0x7d   : > { %v384_v38 = vrot.slane %v383_v37, 4 }
  0x7e   : > { %v390_v39 = vsel %vm358_vm2, %v381_v36, 0.0 }
  0x7f   : > { %v385_v41 = vadd.f32 %v384_v38, %v383_v37  ;;  %v391_v42 = vrot.slane %v390_v39, 4 }
  0x81   : > { %v386_v44 = vrot.slane %v385_v41, 2  ;;  %v392_v45 = vadd.f32 %v391_v42, %v390_v39 }
  0x83   : > { %v387_v48 = vadd.f32 %v386_v44, %v385_v41  ;;  %v393_v49 = vrot.slane %v392_v45, 2 }
  0x85   : > { %v388_v50 = vrot.slane %v387_v48, 1  ;;  %v394_v51 = vadd.f32 %v393_v49, %v392_v45 }
  0x87   : > { %v389_v54 = vadd.f32 %v388_v50, %v387_v48  ;;  %v395_v55 = vrot.slane %v394_v51, 1 }
  0x89   : > { %v396_v56 = vadd.f32 %v395_v55, %v394_v51  ;;  %791 = vrcp.f32 %v389_v54 }
  0x8a   : > { %793 = vlog2.f32 %v389_v54 }
  0x8b   : > { %795 = vlog2.f32 %v396_v56 }
  0x8c   : > { %797 = vrcp.f32 %v396_v56 }
  0x93   : > { %v792_v63 = vpop.eup %791 }
  0x94   : > { %v794_v0 = vpop.eup %793 }
  0x95   : > { %v796_v1 = vpop.eup %795  ;;  %v405_v2 = vmul.f32 0.6931472, %v794_v0 }
  0x96   : > { %v798_v4 = vpop.eup %797  ;;  %v407_v5 = vmul.f32 0.6931472, %v796_v1 }
  0x97   : > { %v408_v7 = vadd.f32 %v405_v2, %v365_v21  ;;  %v401_v8 = vcombine.low %v792_v63, %v798_v4 }
  0x98   : > { %v409_v9 = vadd.f32 %v407_v5, %v372_v23 }
  0x99   : > { %v448_v10 = vsub.f32 %v408_v7, %v440_v3  ;;  %v403_v11 = vmul.f32 %v790_v34, %v401_v8 }
  0x9a   : > { %v449_v12 = vsub.f32 %v409_v9, %v447_v6 }
  0x9b   : > { %v472_v13 = vcombine.high %v403_v11, %v403_v11  ;;  %v474_v14 = vsel %vm358_vm2, %v403_v11, 0.0  ;;  %v458_v15 = vmul.f32 %v428_v32, %v403_v11 }
  0x9c   : > { %v451_v16 = vadd.f32 %v449_v12, %v448_v10 }
  0x9d   : > { %v475_v18 = vsel %vm358_vm2, %v472_v13, 0.0  ;;  %v460_v20 = vcombine.high %v458_v15, %v458_v15  ;;  %v462_v21 = vsel %vm358_vm2, %v458_v15, 0.0 }
  0x9e   : > { %452 = vadd.xlane.f32.xlu0 %v451_v16  ;;  %v476_v22 = vadd.f32 %v475_v18, %v474_v14 }
  0x9f   : > { %v463_v23 = vsel %vm358_vm2, %v460_v20, 0.0 }
  0xa0   : > { %477 = vadd.xlane.f32.xlu1 %v476_v22  ;;  %v464_v25 = vadd.f32 %v463_v23, %v462_v21 }
  0xa2   : > { %465 = vadd.xlane.f32.xlu0 %v464_v25 }
  0xa4   : > { %485 = vadd.xlane.f32.xlu1 %v484_v24 }
 0x12b   : > { %v453_v27 = vpop.xlane.xlu0 %452 }
 0x12c   : > { %v454_v29 = vadd.f32 %v453_v27, %v450_v26 }
 0x12d   : > { %v478_v30 = vpop.xlane.xlu1 %477 }
 0x12e   : > { %456 = vst.msk [vmem:[#allocation5] sm:$0x1] %vm455_vm5, %v454_v29  ;;  %v479_v32 = vadd.f32 %v478_v30, %v470_v28  ;;  %493 = sbr.rel (!%p489_p9) target bundleno = 317 (0x13d), region = 44 }
 0x12f   : > { %v466_v34 = vpop.xlane.xlu0 %465 }
 0x130   : > { %480 = vst.msk [vmem:[#allocation3] sm:$0xf] %vm468_vm6, %v479_v32  ;;  %v467_v35 = vadd.f32 %v466_v34, %v457_v31 }
 0x131   : > { %v486_v36 = vpop.xlane.xlu1 %485 }
 0x132   : > { %v487_v37 = vadd.f32 %v486_v36, %v481_v33  ;;  %469 = vst.msk [vmem:[#allocation2] sm:$0xf] %vm468_vm6, %v467_v35 }
 0x134   : > { %488 = vst.msk [vmem:[#allocation4] sm:$0xf] %vm468_vm6, %v487_v37 }
 0x135   : > { %v500_v41 = vld [vmem:[#allocation5] sm:$0x1] }
 0x136   : > { %501 = vst.msk [vmem:[#allocation11] sm:$0x1] %vm455_vm5, %v500_v41 }
 0x137   : > { %v496_v39 = vld [vmem:[#allocation3] sm:$0xf] }
 0x138   : > { %497 = vst.msk [vmem:[%s1207_s3] sm:$0xf] %vm468_vm6, %v496_v39 }
 0x139   : > { %v494_v38 = vld [vmem:[#allocation2] sm:$0xf] }
 0x13a   : > { %495 = vst.msk [vmem:[%s1206_s2] sm:$0xf] %vm468_vm6, %v494_v38 }
 0x13b   : > { %v498_v40 = vld [vmem:[#allocation4] sm:$0xf] }
 0x13c   : > { %499 = vst.msk [vmem:[%s1208_s4] sm:$0xf] %vm468_vm6, %v498_v40 }
 0x13d PF: > { %p1160_p6 = scmp.eq.s32.totalorder %s690_s24, 1  ;;  %s949_s6 = smov [#allocation11]  }
 0x13e   : > { %s532_s16 = sshll.u32 %s949_s6, 4  ;;  %s533_s16 = int_to_ptr.vmem [resolvable:$true] %s532_s16 }
 0x13f   : > { %s859_s18 = scalar_lea.vmem %s533_s16, 16  ;;  %s865_s26 = scalar_lea.vmem %s533_s16, 32 }
 0x140   : > { %p860_p2 = scmp.ne.s32.totalorder %s533_s16, %s859_s18  ;;  %p866_p1 = scmp.lt.s32.totalorder %s533_s16, %s533_s16 }
 0x141   : > { %p867_p5 = scmp.lt.s32.totalorder %s865_s26, %s859_s18 }
 0x142   : > { %p861_p3 = pnand %p860_p2, %p1160_p6 }
 0x143   : > { %p868_p10 = por %p867_p5, %p866_p1 }
 0x144   : > { %p862_p4 = pneg %p861_p3 }
 0x146   : > { %p869_p11 = pnand %p868_p10, %p862_p4 }
 0x148   : > { %872 = shalt.err (!%p869_p11)
}
 0x149   : > { %s873_s13 = scalar_lea.hbm %s1209_s5, 16 }
 0x14a   : > { %p874_p0 = scmp.ne.s32.totalorder %s1209_s5, %s873_s13  ;;  %p879_p13 = scmp.lt.u32.totalorder %s873_s13, %s1209_s5 }
 0x14c   : > { %p875_p12 = pnand %p874_p0, %p1160_p6 }
 0x14e   : > { %p876_p8 = pneg %p875_p12 }
 0x150   : > { %p881_p7 = pnand %p879_p13, %p876_p8 }
 0x152   : > { %884 = shalt.err (!%p881_p7)
}
 0x153   : > { %724 = dma.vmem_to_hbm [thread:$0]  (%p1160_p6), %s533_s16, 16, %s1209_s5, [#allocation8]  }
 0x154   : > { %918 = dma.done.wait (%p1160_p6), [#allocation8], 16  }
 0x155   : > { %920 = vsyncadd (%p1160_p6), [#allocation8], 4294967280 }
 0x156 PF: > { %s23_s23 = sadd.s32 1, %s943_s23   ;;  %s1220_s18 = smov %s927_s19 }
 0x157   : > { %p20_p9 = scmp.ge.s32.totalorder %s23_s23, 4   ;;  %s1221_s19 = smov %s931_s20 }
 0x158   : > { %s1222_s20 = smov %s1031_s30  ;;  %s1223_s21 = smov %s939_s22 }
 0x159   : > { %s1224_s22 = smov %s1226_s25  ;;  %22 = sbr.rel (!%p20_p9) target bundleno = 7 (0x7), region = 123 }
 0x160   :  { %566 = vsyncpa [#allocation7], 1 }
 0x161   :  { %568 = vsyncpa [#allocation7 + $0x1], 1 }
 0x162   :  { %569 = vsyncpa [#allocation10], 1 }
 0x163   :  { %571 = vsyncpa [#allocation10 + $0x1], 1 }
 0x164   :  { %572 = vsyncpa [#allocation8], 1 }
 0x165   :  { %574 = vsyncpa [#allocation8 + $0x1], 1 }

</bundles_post_ra>
